<compile_context>
chip_gen: v5e
topology: v5e:2x2
jax: 0.10.0
libtpu: 0.0.40
codegen_flags: <defaults>
</compile_context>

<pallas_src>
import functools

import numpy as np

import jax
import jax.numpy as jnp
from jax.experimental import pallas as pl
from jax.experimental.pallas import tpu as pltpu


# ---------------------------------------------------------------------------
# helpers
# ---------------------------------------------------------------------------

@functools.lru_cache(maxsize=1)
def _roll_matches_jnp():
    """Probe pltpu.roll once: True iff roll(x, s)[..., i] == x[..., i - s] (jnp.roll)."""
    def _probe(x_ref, o_ref):
        o_ref[...] = pltpu.roll(x_ref[...], shift=1, axis=1)

    try:
        x = jax.lax.broadcasted_iota(jnp.int32, (8, 128), 1)
        y = pl.pallas_call(
            _probe, out_shape=jax.ShapeDtypeStruct((8, 128), jnp.int32))(x)
        y = jax.device_get(y)
        return bool(y[0, 0] == 127 and y[0, 1] == 0)
    except Exception:
        return False


@functools.lru_cache(maxsize=1)
def _vmem_limit_bytes():
    """Generation-aware VMEM cap: ~half of physical, clamped to [32, 100] MiB."""
    try:
        cap = int(pltpu.get_tpu_info().vmem_capacity_bytes)
    except Exception:
        cap = 128 * 1024 * 1024
    return int(min(max(cap // 2, 32 * 1024 * 1024), 100 * 1024 * 1024))


def _pick_time_tile(L, pad_h, C_in, C_out, K, in_bytes, out_bytes,
                    use_im2col, budget, batch):
    """Largest lane-dense (multiple-of-128, >= pad_h) time tile within the VMEM budget."""
    lo = max(128, pad_h)
    hi = max(lo, 128 * pl.cdiv(L, 128))
    cands = sorted({t for t in (2048, 1024, 512, 256, 128)
                    if lo <= t <= hi} | {lo}, reverse=True)

    rhs_rows = K * C_in if use_im2col else C_in

    def vmem_estimate(tl):
        per_lane = (2 * C_in * in_bytes        # x tile (double-buffered)
                    + 2 * C_out * out_bytes    # out tile (double-buffered)
                    + C_in * in_bytes          # [halo | tile] staging
                    + rhs_rows * in_bytes      # tap / im2col RHS
                    + C_out * 4)               # f32 accumulator
        fixed = (2 * C_in * pad_h * in_bytes          # halo blocks
                 + 2 * K * C_in * C_out * in_bytes    # weights
                 + 2 * C_out * 4)                     # bias
        return tl * per_lane + fixed

    tl = cands[-1]
    for t in cands:
        if vmem_estimate(t) <= budget:
            tl = t
            break
    # v7x has 2 TensorCores: with B == 1 make the time axis provide >= 2 grid steps
    # whenever the sequence allows it.
    if batch == 1 and pl.cdiv(L, tl) < 2:
        smaller = [t for t in cands if t < tl and pl.cdiv(L, t) >= 2]
        if smaller:
            tl = smaller[0]
    return tl


# ---------------------------------------------------------------------------
# kernel
# ---------------------------------------------------------------------------

def _causal_conv1d_kernel(x_ref, h_ref, w_ref, b_ref, o_ref, *,
                          kernel_size, dilation, pad, pad_h, tile_len,
                          use_im2col, use_roll):
    """One (batch, time-tile) grid step.

    x_ref : (1, C_in, TL)            current time tile of x
    h_ref : (1, 1, C_in, pad_h)      causal left halo, right-aligned in pad_h lanes
    w_ref : (C_out, K*C_in) [im2col] or (K, C_out, C_in) [per-tap], MXU dtype
    b_ref : (C_out, 1) f32
    o_ref : (1, C_out, TL)
    """
    tile = x_ref[0]                                           # (C_in, TL)
    if pad > 0:
        # pad_h is a multiple of 128, so this concat is lane-aligned (no relayout).
        ext = jnp.concatenate([h_ref[0, 0], tile], axis=-1)   # (C_in, pad_h + TL)

    def tap(j):
        lead = pad - j * dilation        # how far this tap reaches into the halo
        if lead == 0:
            return tile
        if use_roll:
            # XLU rotate + lane-aligned slice: tap[:, t] = ext[:, pad_h + t - lead]
            return pltpu.roll(ext, shift=lead, axis=1)[:, pad_h:]
        return ext[:, pad_h - lead:pad_h - lead + tile_len]

    if use_im2col:
        # Small, sublane-aligned C_in: one fused MXU matmul, contraction K*C_in.
        taps = [tap(j) for j in range(kernel_size)]
        rhs = taps[0] if kernel_size == 1 else jnp.concatenate(taps, axis=0)
        acc = jnp.dot(w_ref[...], rhs, preferred_element_type=jnp.float32)
    else:
        # Large (or unaligned) C_in: K accumulating matmuls, no im2col staging
        # (v7x MRB accumulates in place; only one tap is live at a time).
        acc = jnp.dot(w_ref[0], tap(0), preferred_element_type=jnp.float32)
        for j in range(1, kernel_size):
            acc = acc + jnp.dot(w_ref[j], tap(j),
                                preferred_element_type=jnp.float32)

    acc = acc + b_ref[...]                                    # f32 bias epilogue
    o_ref[0] = acc.astype(o_ref.dtype)                        # lane-dense full-tile store


# ---------------------------------------------------------------------------
# wrapper
# ---------------------------------------------------------------------------

def causal_conv1d(x, weight, bias, *, dilation, mxu_dtype=None):
    """Causal 1-D convolution (stride 1), matching PyTorch CausalConv1d.forward.

    x : (B, C_in, L); weight : (C_out, C_in, K); bias : (C_out,)  ->  (B, C_out, L)
    mxu_dtype : optional dtype for MXU operands (e.g. jnp.bfloat16 on v6e/v7x);
                accumulation and the bias epilogue stay in f32.
    """
    B, C_in, L = x.shape
    C_out, _, K = weight.shape
    pad = (K - 1) * dilation
    out_dtype = x.dtype
    cdt = np.dtype(mxu_dtype) if mxu_dtype is not None else np.dtype(x.dtype)
    in_bytes = cdt.itemsize
    out_bytes = np.dtype(out_dtype).itemsize

    # Fused im2col only pays off while the contraction does not already fill the MXU,
    # and needs a sublane-aligned C_in so the axis-0 stack is relayout-free.
    use_im2col = (K > 1) and (C_in % 8 == 0) and (K * C_in <= 256)
    use_roll = _roll_matches_jnp()

    pad_h = 128 * pl.cdiv(pad, 128) if pad > 0 else 128   # lane-aligned halo width
    vmem_limit = _vmem_limit_bytes()
    TL = _pick_time_tile(L, pad_h, C_in, C_out, K, in_bytes, out_bytes,
                         use_im2col, budget=(vmem_limit * 3) // 5, batch=B)
    n_lt = pl.cdiv(L, TL)
    Lp = n_lt * TL

    # Single-pass x stream.  Pad L up to a TL multiple so every output store is a
    # full-width lane-dense vst; the pad is trimmed below (right pad never leaks
    # into earlier outputs of a causal conv).
    x_p = x.astype(cdt)
    if Lp > L:
        x_p = jnp.pad(x_p, ((0, 0), (0, 0), (0, Lp - L)))

    # Tiny causal-halo side array: halo[b, lt, :, pad_h-pad:] = x[b, :, lt*TL-pad : lt*TL]
    # (zeros for the first tile == causal left zero padding).  Right-aligning in a
    # 128-lane window keeps the in-kernel [halo | tile] concat lane-aligned.
    halo = jnp.zeros((B, n_lt, C_in, pad_h), cdt)
    if pad > 0 and n_lt > 1:
        xr = x_p.reshape(B, C_in, n_lt, TL)
        tails = jnp.transpose(xr[:, :, :-1, TL - pad:], (0, 2, 1, 3))
        halo = halo.at[:, 1:, :, pad_h - pad:].set(tails)

    if use_im2col:
        # w2d[o, j*C_in + c] = weight[o, c, j]   (matches the stacked tap rows)
        w_arr = jnp.transpose(weight, (0, 2, 1)).reshape(C_out, K * C_in).astype(cdt)
        w_spec = pl.BlockSpec((C_out, K * C_in), lambda b, lt: (0, 0))
    else:
        # w3[j] = weight[:, :, j] -> one (C_out, C_in) LHS per tap
        w_arr = jnp.transpose(weight, (2, 0, 1)).astype(cdt)
        w_spec = pl.BlockSpec((K, C_out, C_in), lambda b, lt: (0, 0, 0))
    bias2d = bias.reshape(C_out, 1).astype(jnp.float32)

    kernel = functools.partial(
        _causal_conv1d_kernel,
        kernel_size=K, dilation=dilation, pad=pad, pad_h=pad_h,
        tile_len=TL, use_im2col=use_im2col, use_roll=use_roll)

    cost = pl.CostEstimate(
        flops=2 * B * L * C_out * C_in * K,
        transcendentals=0,
        bytes_accessed=int(x_p.size * in_bytes + halo.size * in_bytes
                           + w_arr.size * in_bytes + bias2d.size * 4
                           + B * C_out * Lp * out_bytes))

    out = pl.pallas_call(
        kernel,
        out_shape=jax.ShapeDtypeStruct((B, C_out, Lp), out_dtype),
        grid_spec=pltpu.PrefetchScalarGridSpec(
            num_scalar_prefetch=0,
            grid=(B, n_lt),
            in_specs=[
                pl.BlockSpec((1, C_in, TL), lambda b, lt: (b, 0, lt)),
                pl.BlockSpec((1, 1, C_in, pad_h), lambda b, lt: (b, lt, 0, 0)),
                w_spec,
                pl.BlockSpec((C_out, 1), lambda b, lt: (0, 0)),
            ],
            out_specs=pl.BlockSpec((1, C_out, TL), lambda b, lt: (b, 0, lt)),
        ),
        compiler_params=pltpu.CompilerParams(
            dimension_semantics=("parallel", "parallel"),
            vmem_limit_bytes=vmem_limit,
        ),
        cost_estimate=cost,
    )(x_p, halo, w_arr, bias2d)

    return out[:, :, :L] if Lp > L else out


# ---------------------------------------------------------------------------
# reference + self-test
# ---------------------------------------------------------------------------

def _reference_causal_conv1d(x, weight, bias, *, dilation, precision=None):
    """Plain-JAX reference mirroring PyTorch: conv1d(pad=(K-1)*d), slice off right pad."""
    pad = (weight.shape[-1] - 1) * dilation
    y = jax.lax.conv_general_dilated(
        x, weight,
        window_strides=(1,),
        padding=[(pad, pad)],
        rhs_dilation=(dilation,),
        dimension_numbers=("NCH", "OIH", "NCH"),
        precision=precision,
    )
    y = y + bias.reshape(1, -1, 1)
    return y[:, :, :-pad] if pad > 0 else y


if __name__ == "__main__":
    root = jax.random.PRNGKey(0)

    def make_inputs(B, C_in, C_out, L, K, seed):
        kx, kw, kb = jax.random.split(jax.random.fold_in(root, seed), 3)
        x = jax.random.normal(kx, (B, C_in, L), dtype=jnp.float32)
        w = jax.random.normal(kw, (C_out, C_in, K), dtype=jnp.float32) * 0.1
        b = jax.random.normal(kb, (C_out,), dtype=jnp.float32) * 0.1
        return x, w, b

    def check(out, x, w, b, dil, atol, rtol):
        # Both HIGHEST and default XLA conv precision are legitimate f32 evaluations;
        # accept a match against either (catches layout/halo bugs either way).
        ref_hi = _reference_causal_conv1d(
            x, w, b, dilation=dil, precision=jax.lax.Precision.HIGHEST)
        ref_def = _reference_causal_conv1d(x, w, b, dilation=dil)
        assert out.shape == ref_hi.shape
        assert (jnp.allclose(out, ref_hi, atol=atol, rtol=rtol)
                or jnp.allclose(out, ref_def, atol=atol, rtol=rtol))
        return ref_hi

    # 1) Module's small config: batch=2, in=4, out=6, seq=16, K=3, dilation=2 (f32).
    x, w, b = make_inputs(2, 4, 6, 16, 3, seed=0)
    out = jax.block_until_ready(causal_conv1d(x, w, b, dilation=2))
    assert out.shape == (2, 6, 16)
    ref = check(out, x, w, b, 2, atol=5e-4, rtol=5e-4)

    # 2) Same config with bf16 MXU operands (f32 accumulation) - looser tolerance.
    out_bf16 = jax.block_until_ready(
        causal_conv1d(x, w, b, dilation=2, mxu_dtype=jnp.bfloat16))
    assert jnp.allclose(out_bf16, ref, atol=5e-2, rtol=5e-2)

    # 3) Multi-tile sequence (real halo traffic, L not a multiple of 128), per-tap path.
    x3, w3, b3 = make_inputs(2, 4, 6, 300, 3, seed=1)
    out3 = jax.block_until_ready(causal_conv1d(x3, w3, b3, dilation=2))
    check(out3, x3, w3, b3, 2, atol=5e-4, rtol=5e-4)

    # 4) Sublane-aligned small C_in -> fused im2col path, B=1 (time axis parallelism).
    x4, w4, b4 = make_inputs(1, 8, 16, 300, 3, seed=2)
    out4 = jax.block_until_ready(causal_conv1d(x4, w4, b4, dilation=1))
    check(out4, x4, w4, b4, 1, atol=5e-4, rtol=5e-4)

    print("KERNEL_OK")
</pallas_src>

<mosaic_0001>
module attributes {stable_mosaic.version = 11 : i64} {
  func.func @_probe(%arg0: memref<8x128xi32, #tpu.memory_space<vmem>>, %arg1: memref<8x128xi32, #tpu.memory_space<vmem>>) attributes {dimension_semantics = [], scalar_prefetch = 0 : i64, scratch_operands = 0 : i64, tpu.core_type = #tpu.core_type<tc>} {
    %c0 = arith.constant 0 : index
    %c0_0 = arith.constant 0 : index
    %0 = vector.load %arg0[%c0, %c0_0] : memref<8x128xi32, #tpu.memory_space<vmem>>, vector<8x128xi32>
    %c1_i32 = arith.constant 1 : i32
    %1 = tpu.dynamic_rotate %0 by %c1_i32 dim 1 : vector<8x128xi32>, i32 -> vector<8x128xi32>
    %c0_1 = arith.constant 0 : index
    %c0_2 = arith.constant 0 : index
    %2 = vector.load %arg1[%c0_1, %c0_2] : memref<8x128xi32, #tpu.memory_space<vmem>>, vector<8x128xi32>
    tpu.vector_store %arg1[%c0_1, %c0_2], %1 {strides = array<i32>} : memref<8x128xi32, #tpu.memory_space<vmem>>, vector<8x128xi32>,
    return
  }
}

module attributes {stable_mosaic.version = 11 : i64} {
  func.func @_causal_conv1d_kernel(%arg0: i32, %arg1: i32, %arg2: memref<1x4x128xf32, #tpu.memory_space<vmem>>, %arg3: memref<1x1x4x128xf32, #tpu.memory_space<vmem>>, %arg4: memref<3x6x4xf32, #tpu.memory_space<vmem>>, %arg5: memref<6x1xf32, #tpu.memory_space<vmem>>, %arg6: memref<1x6x128xf32, #tpu.memory_space<vmem>>) attributes {dimension_semantics = [#tpu.dimension_semantics<parallel>, #tpu.dimension_semantics<parallel>], iteration_bounds = array<i64: 2, 1>, scalar_prefetch = 0 : i64, scratch_operands = 0 : i64, tpu.core_type = #tpu.core_type<tc>, window_params = [{transform_indices = @transform_0, window_bounds = array<i64: 1, 4, 128>}, {transform_indices = @transform_1, window_bounds = array<i64: 1, 1, 4, 128>}, {pipeline_mode = #tpu.pipeline_mode<synchronous>, transform_indices = @transform_2, window_bounds = array<i64: 3, 6, 4>}, {pipeline_mode = #tpu.pipeline_mode<synchronous>, transform_indices = @transform_3, window_bounds = array<i64: 6, 1>}, {transform_indices = @transform_4, window_bounds = array<i64: 1, 6, 128>}]} {
    %c0 = arith.constant 0 : index
    %c0_0 = arith.constant 0 : index
    %c0_1 = arith.constant 0 : index
    %0 = vector.load %arg2[%c0, %c0_0, %c0_1] : memref<1x4x128xf32, #tpu.memory_space<vmem>>, vector<1x4x128xf32>
    %1 = vector.shape_cast %0 : vector<1x4x128xf32> to vector<4x128xf32>
    %c0_2 = arith.constant 0 : index
    %c0_3 = arith.constant 0 : index
    %c0_4 = arith.constant 0 : index
    %c0_5 = arith.constant 0 : index
    %2 = vector.load %arg3[%c0_2, %c0_3, %c0_4, %c0_5] : memref<1x1x4x128xf32, #tpu.memory_space<vmem>>, vector<1x1x4x128xf32>
    %3 = vector.shape_cast %2 : vector<1x1x4x128xf32> to vector<4x128xf32>
    %4 = tpu.concatenate %3, %1 in 1 : vector<4x128xf32>, vector<4x128xf32> -> vector<4x256xf32>
    %c0_6 = arith.constant 0 : index
    %c0_7 = arith.constant 0 : index
    %c0_8 = arith.constant 0 : index
    %5 = vector.load %arg4[%c0_6, %c0_7, %c0_8] : memref<3x6x4xf32, #tpu.memory_space<vmem>>, vector<1x6x4xf32>
    %6 = vector.shape_cast %5 : vector<1x6x4xf32> to vector<6x4xf32>
    %7 = vector.extract_strided_slice %4 {offsets = [0, 124], sizes = [4, 128], strides = [1, 1]} : vector<4x256xf32> to vector<4x128xf32>
    %cst = arith.constant dense<0.000000e+00> : vector<6x128xf32>
    %8 = tpu.matmul %6, %7, %cst {dimension_numbers = #tpu.dot_dimension_numbers<[1], [0], [0], [1], [0, 0, 1, 1], [], []>} : vector<6x4xf32>, vector<4x128xf32>, vector<6x128xf32> -> vector<6x128xf32>
    %c1 = arith.constant 1 : index
    %c0_9 = arith.constant 0 : index
    %c0_10 = arith.constant 0 : index
    %9 = vector.load %arg4[%c1, %c0_9, %c0_10] : memref<3x6x4xf32, #tpu.memory_space<vmem>>, vector<1x6x4xf32>
    %10 = vector.shape_cast %9 : vector<1x6x4xf32> to vector<6x4xf32>
    %11 = vector.extract_strided_slice %4 {offsets = [0, 126], sizes = [4, 128], strides = [1, 1]} : vector<4x256xf32> to vector<4x128xf32>
    %cst_11 = arith.constant dense<0.000000e+00> : vector<6x128xf32>
    %12 = tpu.matmul %10, %11, %cst_11 {dimension_numbers = #tpu.dot_dimension_numbers<[1], [0], [0], [1], [0, 0, 1, 1], [], []>} : vector<6x4xf32>, vector<4x128xf32>, vector<6x128xf32> -> vector<6x128xf32>
    %13 = arith.addf %8, %12 : vector<6x128xf32>
    %c2 = arith.constant 2 : index
    %c0_12 = arith.constant 0 : index
    %c0_13 = arith.constant 0 : index
    %14 = vector.load %arg4[%c2, %c0_12, %c0_13] : memref<3x6x4xf32, #tpu.memory_space<vmem>>, vector<1x6x4xf32>
    %15 = vector.shape_cast %14 : vector<1x6x4xf32> to vector<6x4xf32>
    %cst_14 = arith.constant dense<0.000000e+00> : vector<6x128xf32>
    %16 = tpu.matmul %15, %1, %cst_14 {dimension_numbers = #tpu.dot_dimension_numbers<[1], [0], [0], [1], [0, 0, 1, 1], [], []>} : vector<6x4xf32>, vector<4x128xf32>, vector<6x128xf32> -> vector<6x128xf32>
    %17 = arith.addf %13, %16 : vector<6x128xf32>
    %c0_15 = arith.constant 0 : index
    %c0_16 = arith.constant 0 : index
    %18 = vector.load %arg5[%c0_15, %c0_16] : memref<6x1xf32, #tpu.memory_space<vmem>>, vector<6x1xf32>
    %19 = vector.broadcast %18 : vector<6x1xf32> to vector<6x128xf32>
    %20 = arith.addf %17, %19 : vector<6x128xf32>
    %c0_17 = arith.constant 0 : index
    %c0_18 = arith.constant 0 : index
    %c0_19 = arith.constant 0 : index
    %21 = vector.load %arg6[%c0_17, %c0_18, %c0_19] : memref<1x6x128xf32, #tpu.memory_space<vmem>>, vector<1x6x128xf32>
    %22 = vector.shape_cast %21 : vector<1x6x128xf32> to vector<6x128xf32>
    %23 = vector.shape_cast %20 : vector<6x128xf32> to vector<1x6x128xf32>
    tpu.vector_store %arg6[%c0_17, %c0_18, %c0_19], %23 {strides = array<i32>} : memref<1x6x128xf32, #tpu.memory_space<vmem>>, vector<1x6x128xf32>,
    return
  }
  func.func @transform_0(%arg0: i32, %arg1: i32) -> (i32, i32, i32) {
    %c0_i32 = arith.constant 0 : i32
    %c0_i32_0 = arith.constant 0 : i32
    return %arg0, %c0_i32, %arg1 : i32, i32, i32
  }
  func.func @transform_1(%arg0: i32, %arg1: i32) -> (i32, i32, i32, i32) {
    %c0_i32 = arith.constant 0 : i32
    %c0_i32_0 = arith.constant 0 : i32
    %c0_i32_1 = arith.constant 0 : i32
    return %arg0, %arg1, %c0_i32, %c0_i32_0 : i32, i32, i32, i32
  }
  func.func @transform_2(%arg0: i32, %arg1: i32) -> (i32, i32, i32) {
    %c0_i32 = arith.constant 0 : i32
    %c0_i32_0 = arith.constant 0 : i32
    %c0_i32_1 = arith.constant 0 : i32
    %c0_i32_2 = arith.constant 0 : i32
    return %c0_i32, %c0_i32_0, %c0_i32_1 : i32, i32, i32
  }
  func.func @transform_3(%arg0: i32, %arg1: i32) -> (i32, i32) {
    %c0_i32 = arith.constant 0 : i32
    %c0_i32_0 = arith.constant 0 : i32
    %c0_i32_1 = arith.constant 0 : i32
    return %c0_i32, %c0_i32_0 : i32, i32
  }
  func.func @transform_4(%arg0: i32, %arg1: i32) -> (i32, i32, i32) {
    %c0_i32 = arith.constant 0 : i32
    %c0_i32_0 = arith.constant 0 : i32
    return %arg0, %c0_i32, %arg1 : i32, i32, i32
  }
}

</mosaic_0001>

<bundles_post_ra>
// kernel: tpu_custom_call.1
= control target key start
LH: loop header
LB: loop body
LE: loop exit
PB: predicated region body
PF: predicated region fallthrough
CT: control target
= control target key end

     0   :  { %6 = vsyncpa [#allocation3], 0  ;;  %s118_s0 = inlined_call_operand.hbm [shape: s32[8,128], index: 0, kind: input, shape index: {}]   ;;  %s119_s1 = inlined_call_operand.hbm [shape: s32[8,128], index: 1, kind: output, shape index: {}]  }
   0x1   :  { %7 = vsyncpa [#allocation4], 0  ;;  %s13_s8 = sshll.u32 %s118_s0, 4  ;;  %s99_s9 = smov [#allocation2]   ;;  %s14_s8 = int_to_ptr.hbm [resolvable:$true] %s13_s8 }
   0x2   :  { %s15_s10 = sshll.u32 %s99_s9, 4  ;;  %s16_s10 = int_to_ptr.vmem [resolvable:$true] %s15_s10 }
   0x3   :  { %18 = dma.hbm_to_vmem [thread:$0]  %s14_s8, 128, %s16_s10, [#allocation3]  }
   0x4   :  { %95 = dma.done.wait [#allocation3], 128  }
   0x5   :  { %96 = vsyncadd [#allocation3], 4294967168  ;;  %v23_v0 = vld [vmem:[#allocation2] sm:$0xff]  ;;  %s100_s11 = smov 1   ;;  %s101_s12 = smov [#allocation5]  }
   0x6   :  { %24 = vrot.lane.b32.xlu0 %v23_v0, %s100_s11  ;;  %s32_s13 = sshll.u32 %s101_s12, 4  ;;  %s34_s16 = sshll.u32 %s119_s1, 4  ;;  %s33_s13 = int_to_ptr.vmem [resolvable:$true] %s32_s13  ;;  %s35_s16 = int_to_ptr.hbm [resolvable:$true] %s34_s16 }
  0x78   :  { %v25_v1 = vpop.permute.xlu0 %24 }
  0x79   :  { %26 = vst [vmem:[#allocation5] sm:$0xff] %v25_v1 }
  0x7a   :  { %37 = dma.vmem_to_hbm [thread:$0]  %s33_s13, 128, %s35_s16, [#allocation4]  }
  0x7b   :  { %97 = dma.done.wait [#allocation4], 128  }
  0x7c   :  { %98 = vsyncadd [#allocation4], 4294967168 }
  0x7d   :  { %42 = vsyncpa [#allocation3], 1 }
  0x7e   :  { %43 = vsyncpa [#allocation4], 1 }

// kernel: tpu_custom_call.1
= control target key start
LH: loop header
LB: loop body
LE: loop exit
PB: predicated region body
PF: predicated region fallthrough
CT: control target
= control target key end

     0   :  { %s546_s15 = smov 0   ;;  %s548_s16 = smov 0   ;;  %s605_s0 = inlined_call_operand.vmem [shape: f32[2,4,128], index: 0, kind: input, shape index: {}]   ;;  %s606_s1 = inlined_call_operand.vmem [shape: f32[2,1,4,128], index: 1, kind: input, shape index: {}]   ;;  %s607_s2 = inlined_call_operand.vmem [shape: f32[3,6,4], index: 2, kind: input, shape index: {}]   ;;  %s608_s3 = inlined_call_operand.vmem [shape: f32[6,1], index: 3, kind: input, shape index: {}]   ;;  %s609_s4 = inlined_call_operand.vmem [shape: f32[2,6,128], index: 4, kind: output, shape index: {}]  }
   0x1   :  { %s550_s17 = smov 0  }
   0x2 LB: > { %s26_s18 = sadd.s32 1, %s512_s16  ;;  %p451_p0 = scmp.ge.s32.totalorder %s516_s17, 1  ;;  %s516_s17 = sphi %s550_s17, %s14_s17   ;;  %s512_s16 = sphi %s548_s16, %s611_s16   ;;  %s508_s15 = sphi %s546_s15, %s610_s15  }
   0x3   : > { %p28_p1 = scmp.ge.s32.totalorder %s26_s18, 2  ;;  %p194_p2 = scmp.lt.s32.totalorder %s516_s17, 3 }
   0x5   : > { %s613_s18 = smov (%p28_p1, %s26_s18), 0  ;;  %p195_p3 = pnand %p451_p0, %p194_p2 }
   0x6   : > { %p231_p4 = scmp.lt.s32.totalorder (!%p195_p3), %s508_s15, 1  ;;  %s518_s23 = smov (!%p195_p3), 4  }
   0x7   : > { %198 = sbr.rel (%p195_p3) target bundleno = 274 (0x112), region = 36  ;;  %s519_s24 = smov (!%p195_p3), 2  }
   0xc   : > { %s615_s15 = smov (!%p231_p4, %s508_s15), 1  ;;  %vm269_vm0 = vcmask 1043456   ;;  %vm265_vm1 = vcmask 31744   ;;  %v460_v2 = vld [vmem:[%s607_s2 + $0x10] sm:$0x3f]  ;;  %v520_v4 = vmov 0  }
   0xd   : > { %s452_s19 = sshll.u32 %s615_s15, 2  ;;  %v350_v3 = vld [vmem:[%s608_s3] sm:$0x3f]  ;;  %492 = vset.pattern.permute.xlu2 %v520_v4  ;;  %493 = vset.pattern.permute.xlu0 %v520_v4  ;;  %vm263_vm2 = vcmask 15360   ;;  %v455_v9 = vld [vmem:[%s607_s2 + $0x8] sm:$0x3f] }
   0xe   : > { %s244_s22 = scalar_lea.vmem %s606_s1, %s452_s19  ;;  %s237_s27 = scalar_lea.vmem %s605_s0, %s452_s19  ;;  %353 = vperm.xlu2 %492, %v350_v3   ;;  %v254_v10 = vld [vmem:[%s607_s2] sm:$0x3f] }
   0xf   : > { %v253_v0 = vld [vmem:[%s244_s22] sm:$0xf]  ;;  %s454_s10 = sshll.u32 %s615_s15, 3 }
  0x10   : > { %292 = vrot.lane.b32.xlu1 %v253_v0, %s518_s23  ;;  %259 = vrot.lane.b32.xlu0 %v253_v0, %s519_s24  ;;  %v252_v1 = vld [vmem:[%s237_s27] sm:$0xf]  ;;  %s251_s13 = scalar_lea.vmem %s609_s4, %s454_s10 }
  0x11   : > { %461 = vmatpush.msk.msra.mxu2 %vm269_vm0, %v252_v1 }
  0x12   : > { %462 = vmatmul.msk.f32.vlgmr.msra.gmra.mxu2 %vm265_vm1, %v460_v2 }
  0x18   : > { %294 = vrot.lane.b32.xlu1 %v252_v1, %s518_s23  ;;  %261 = vrot.lane.b32.xlu0 %v252_v1, %s519_s24 }
  0x68   : > { %v354_v17 = vpop.permute.xlu2 %353 }
  0x82   : > { %v293_v5 = vpop.permute.xlu1 %292  ;;  %v260_v6 = vpop.permute.xlu0 %259 }
  0x8a   : > { %v295_v7 = vpop.permute.xlu1 %294  ;;  %v262_v8 = vpop.permute.xlu0 %261 }
  0x8b   : > { %v264_v11 = vsel %vm263_vm2, %v260_v6, %v262_v8  ;;  %v296_v12 = vsel %vm265_vm1, %v293_v5, %v295_v7 }
  0x8c   : > { %456 = vmatpush.msk.msra.mxu0 %vm269_vm0, %v264_v11  ;;  %458 = vmatpush.msk.msra.mxu1 %vm269_vm0, %v296_v12 }
  0x8d   : > { %457 = vmatmul.msk.f32.vlgmr.msra.gmra.mxu0 %vm265_vm1, %v455_v9  ;;  %459 = vmatmul.msk.f32.vlgmr.msra.gmra.mxu1 %vm265_vm1, %v254_v10 }
  0x95   : > { %v346_v13 = vpop.f32.mrf.mxu2 }
 0x10a   : > { %v289_v14 = vpop.f32.mrf.mxu0  ;;  %v319_v15 = vpop.f32.mrf.mxu1 }
 0x10b   : > { %v320_v16 = vadd.f32 %v319_v15, %v289_v14 }
 0x10d   : > { %v349_v18 = vadd.f32 %v346_v13, %v320_v16 }
 0x10f   : > { %v356_v19 = vadd.f32 %v354_v17, %v349_v18 }
 0x111   : > { %357 = vst [vmem:[%s251_s13] sm:$0x3f] %v356_v19 }
 0x112 PF: > { %s14_s17 = sadd.s32 1, %s516_s17   ;;  %s610_s15 = smov %s512_s16 }
 0x113   : > { %p11_p5 = scmp.ge.s32.totalorder %s14_s17, 4   ;;  %s611_s16 = smov %s613_s18 }
 0x115   :  { %13 = sbr.rel (!%p11_p5) target bundleno = 2 (0x2), region = 71 }

</bundles_post_ra>
